<compile_context>
chip_gen: v6e
topology: v6e:2x2x1
jax: 0.10.0
libtpu: 0.0.40
codegen_flags: <defaults>
</compile_context>

<pallas_src>
import jax
import jax.numpy as jnp
from jax.experimental import pallas as pl
from jax.experimental.pallas import tpu as pltpu


VMEM_LIMIT_BYTES = 48 * 1024 * 1024    # safe on v7x (64 MiB physical), ample on v5e/v6e
TILE_BUDGET_BYTES = 24 * 1024 * 1024   # target for the double-buffered working set


# ---------------------------------------------------------------------------
# helpers
# ---------------------------------------------------------------------------
def _round_up(x, m):
    return (x + m - 1) // m * m


def _pad_to(x, shape):
    pads = [(0, s - d) for d, s in zip(x.shape, shape)]
    return jnp.pad(x, pads)


def _largest_divisor_tile(dim, cap):
    """Largest multiple of 128 that divides `dim` (a 128-multiple) and is <= cap."""
    t = min(cap, dim)
    t -= t % 128
    while t > 128:
        if dim % t == 0:
            return t
        t -= 128
    return 128


def _pick_mm_tiles(m, k, n, out_itemsize, budget=TILE_BUDGET_BYTES):
    """Tiles (tm, tn, tk) for a (m,k)@(k,n) matmul with an f32 VMEM accumulator.

    Prefers tn == n (full output width -> LHS streamed exactly once) and the
    biggest tm/tk that keep the double-buffered working set under `budget`.
    """
    # Row tile: biggest <= 512 that divides m, but keep >= 2 row tiles when
    # possible so both v7x TensorCores get work on the parallel i axis.
    tm_all = [c for c in (512, 256, 128) if m % c == 0]
    tm = next((c for c in tm_all if m // c >= 2), tm_all[-1])
    # Column tile: FULL n first, then progressively narrower fallbacks.
    tn_opts = [n] + [c for c in (1024, 512, 256, 128) if c < n and n % c == 0]
    for tn in tn_opts:
        for tk_cap in (2048, 1024, 512, 256, 128):
            tk = _largest_divisor_tile(k, tk_cap)
            ws = (tm * tn * 4                    # f32 accumulator
                  + 2 * tm * tk * 2              # bf16 LHS tiles (double-buffered)
                  + 2 * tk * tn * 2              # bf16 RHS tiles (double-buffered)
                  + 2 * tm * tn * out_itemsize   # output tiles (double-buffered)
                  + 2 * 8 * tn * 4)              # bias tile (tiny)
            if ws <= budget:
                return tm, tn, tk
    return tm, 128, 128


# ---------------------------------------------------------------------------
# Pallas kernel 1: feature transform  XW = X @ W   (tiled, f32 accumulator)
# ---------------------------------------------------------------------------
def _xw_kernel(x_ref, w_ref, o_ref, acc_ref):
    @pl.when(pl.program_id(2) == 0)
    def _():
        acc_ref[...] = jnp.zeros_like(acc_ref)

    acc_ref[...] += jnp.dot(x_ref[...], w_ref[...],
                            preferred_element_type=jnp.float32)

    @pl.when(pl.program_id(2) == pl.num_programs(2) - 1)
    def _():
        o_ref[...] = acc_ref[...].astype(o_ref.dtype)


def feature_transform(x, w):
    """XW = X @ W with X:(N,Cin) bf16, W:(Cin,Cout) bf16 -> (N,Cout) bf16."""
    n, c_in = x.shape
    c_out = w.shape[1]
    tm, tn, tk = _pick_mm_tiles(n, c_in, c_out, 2)
    grid = (n // tm, c_out // tn, c_in // tk)
    n_i, n_j = grid[0], grid[1]
    return pl.pallas_call(
        _xw_kernel,
        out_shape=jax.ShapeDtypeStruct((n, c_out), jnp.bfloat16),
        grid_spec=pltpu.PrefetchScalarGridSpec(
            num_scalar_prefetch=0,
            grid=grid,
            in_specs=[
                pl.BlockSpec((tm, tk), lambda i, j, k: (i, k)),
                pl.BlockSpec((tk, tn), lambda i, j, k: (k, j)),
            ],
            out_specs=pl.BlockSpec((tm, tn), lambda i, j, k: (i, j)),
            scratch_shapes=[pltpu.VMEM((tm, tn), jnp.float32)],
        ),
        compiler_params=pltpu.CompilerParams(
            dimension_semantics=("parallel", "parallel", "arbitrary"),
            vmem_limit_bytes=VMEM_LIMIT_BYTES,
        ),
        cost_estimate=pl.CostEstimate(
            flops=2 * n * c_in * c_out,
            transcendentals=0,
            bytes_accessed=(n * c_in * 2 * n_j        # X re-read per column tile
                            + c_in * c_out * 2 * n_i  # W re-read per row tile
                            + n * c_out * 2),
        ),
    )(x, w)


# ---------------------------------------------------------------------------
# Pallas kernel 2: aggregation + bias + ReLU   H = relu(A_norm @ XW + b)
# ---------------------------------------------------------------------------
def _agg_kernel(a_ref, xw_ref, b_ref, o_ref, acc_ref):
    @pl.when(pl.program_id(2) == 0)
    def _():
        acc_ref[...] = jnp.zeros_like(acc_ref)

    acc_ref[...] += jnp.dot(a_ref[...], xw_ref[...],
                            preferred_element_type=jnp.float32)

    @pl.when(pl.program_id(2) == pl.num_programs(2) - 1)
    def _():
        # f32 epilogue (bias broadcast + ReLU) runs once per (i, j) tile,
        # never inside the k reduction loop (v5e VPU has no bf16 paths).
        h = acc_ref[...] + b_ref[...]
        o_ref[...] = jnp.maximum(h, 0.0).astype(o_ref.dtype)


def aggregate_bias_relu(a_norm, xw, b, out_dtype):
    """relu(A_norm @ XW + b); A:(N,N) bf16, XW:(N,C) bf16, b:(1,C) f32."""
    n = a_norm.shape[0]
    c_out = xw.shape[1]
    out_isize = jnp.dtype(out_dtype).itemsize
    tm, tn, tk = _pick_mm_tiles(n, n, c_out, out_isize)
    grid = (n // tm, c_out // tn, n // tk)   # j collapses to 1 when tn == c_out
    n_i, n_j = grid[0], grid[1]
    return pl.pallas_call(
        _agg_kernel,
        out_shape=jax.ShapeDtypeStruct((n, c_out), out_dtype),
        grid_spec=pltpu.PrefetchScalarGridSpec(
            num_scalar_prefetch=0,
            grid=grid,
            in_specs=[
                pl.BlockSpec((tm, tk), lambda i, j, k: (i, k)),   # A row/k tile
                pl.BlockSpec((tk, tn), lambda i, j, k: (k, j)),   # XW k/col tile
                pl.BlockSpec((1, tn), lambda i, j, k: (0, j)),    # bias
            ],
            out_specs=pl.BlockSpec((tm, tn), lambda i, j, k: (i, j)),
            scratch_shapes=[pltpu.VMEM((tm, tn), jnp.float32)],
        ),
        compiler_params=pltpu.CompilerParams(
            dimension_semantics=("parallel", "parallel", "arbitrary"),
            vmem_limit_bytes=VMEM_LIMIT_BYTES,
        ),
        cost_estimate=pl.CostEstimate(
            flops=2 * n * n * c_out,
            transcendentals=0,
            bytes_accessed=(n * n * 2 * n_j            # A re-read per column tile
                            + n * c_out * 2 * n_i      # XW re-read per row tile
                            + c_out * 4 * n_i          # bias
                            + n * c_out * out_isize),  # output
        ),
    )(a_norm, xw, b)


# ---------------------------------------------------------------------------
# Plain-JAX glue: GCN symmetric normalization of the adjacency (+ self-loops)
# ---------------------------------------------------------------------------
def build_norm_adj(edge_index, num_nodes):
    src, dst = edge_index[0], edge_index[1]
    adj = jnp.zeros((num_nodes, num_nodes), jnp.float32).at[dst, src].add(1.0)
    # PyG gcn_norm uses add_remaining_self_loops: only nodes WITHOUT an
    # existing self-loop get a weight-1 loop added.
    diag = jnp.diagonal(adj)
    adj = adj + jnp.diag(jnp.where(diag > 0, 0.0, 1.0))
    deg = adj.sum(axis=1)
    dinv = jnp.where(deg > 0, jax.lax.rsqrt(deg), 0.0)
    return dinv[:, None] * adj * dinv[None, :]               # D^-1/2 A_hat D^-1/2


def gcn_encoder(x, edge_index, params):
    """Forward pass of GCNEncoder (inference mode: dropout is identity)."""
    n, c_in = x.shape
    n_pad = _round_up(n, 128)          # node dim: 128 multiples (A cost is quadratic)
    c_in_pad = _round_up(c_in, 256)    # feature dims: 256 multiples (MXU-wide tiles)

    # Zero-padding keeps the math exact: padded A rows/cols are zero, so padded
    # node rows (which pick up relu(bias)) can never feed real rows; padded
    # feature cols stay zero because the padded W rows/cols are zero.
    a_norm = build_norm_adj(edge_index, n)
    a_pad = _pad_to(a_norm, (n_pad, n_pad)).astype(jnp.bfloat16)
    h = _pad_to(x, (n_pad, c_in_pad)).astype(jnp.bfloat16)

    num_layers = len(params)
    c_out_last = params[-1][0].shape[1]
    for li, (w, b) in enumerate(params):
        c_prev_pad = h.shape[1]
        c_out_pad = _round_up(w.shape[1], 256)
        w_pad = _pad_to(w, (c_prev_pad, c_out_pad)).astype(jnp.bfloat16)
        b_pad = _pad_to(b, (1, c_out_pad)).astype(jnp.float32)

        xw = feature_transform(h, w_pad)                       # X @ W (once per layer)
        out_dtype = jnp.float32 if li == num_layers - 1 else jnp.bfloat16
        h = aggregate_bias_relu(a_pad, xw, b_pad, out_dtype)   # relu(A @ XW + b)

    return h[:n, :c_out_last].astype(jnp.float32)


# ---------------------------------------------------------------------------
# Deterministic parameter init (Glorot for W, small deterministic bias)
# ---------------------------------------------------------------------------
def _glorot(key, shape):
    fan_in, fan_out = shape
    limit = jnp.sqrt(6.0 / (fan_in + fan_out))
    return jax.random.uniform(key, shape, jnp.float32, -limit, limit)


def init_params(key, in_channels, hidden, num_layers):
    dims = [in_channels] + [hidden] * num_layers
    params = []
    for i in range(num_layers):
        key, kw, kb = jax.random.split(key, 3)
        w = _glorot(kw, (dims[i], dims[i + 1]))
        b = 0.01 * jax.random.normal(kb, (1, dims[i + 1]), jnp.float32)
        params.append((w, b))
    return params


# ---------------------------------------------------------------------------
# Pure-JAX f32 reference for correctness check
# ---------------------------------------------------------------------------
def gcn_encoder_ref(x, edge_index, params):
    a_norm = build_norm_adj(edge_index, x.shape[0])
    for w, b in params:
        x = jnp.maximum(a_norm @ (x @ w) + b, 0.0)
    return x


if __name__ == "__main__":
    N = 16            # number of graph nodes
    IN_CHANNELS = 8
    HIDDEN = 32
    NUM_LAYERS = 2
    NUM_EDGES = 40

    key = jax.random.PRNGKey(0)
    kx, ke, kp = jax.random.split(key, 3)

    x = jax.random.normal(kx, (N, IN_CHANNELS), jnp.float32)
    edge_index = jax.random.randint(ke, (2, NUM_EDGES), 0, N, jnp.int32)
    params = init_params(kp, IN_CHANNELS, HIDDEN, NUM_LAYERS)

    out = gcn_encoder(x, edge_index, params)
    out = jax.block_until_ready(out)

    ref = gcn_encoder_ref(x, edge_index, params)
    assert out.shape == (N, HIDDEN)
    # bf16 kernel inputs -> tolerance loosened vs the f32 reference
    assert jnp.allclose(out, ref, atol=3e-2, rtol=3e-2), "mismatch vs reference"

    print("KERNEL_OK")
</pallas_src>

<mosaic_0001>
module attributes {stable_mosaic.version = 11 : i64} {
  func.func @_xw_kernel(%arg0: i32, %arg1: i32, %arg2: i32, %arg3: memref<128x256xbf16, #tpu.memory_space<vmem>>, %arg4: memref<256x256xbf16, #tpu.memory_space<vmem>>, %arg5: memref<128x256xbf16, #tpu.memory_space<vmem>>, %arg6: memref<128x256xf32, #tpu.memory_space<vmem>>) attributes {dimension_semantics = [#tpu.dimension_semantics<parallel>, #tpu.dimension_semantics<parallel>, #tpu.dimension_semantics<arbitrary>], iteration_bounds = array<i64: 1, 1, 1>, scalar_prefetch = 0 : i64, scratch_operands = 1 : i64, tpu.core_type = #tpu.core_type<tc>, window_params = [{transform_indices = @transform_0, window_bounds = array<i64: 128, 256>}, {transform_indices = @transform_1, window_bounds = array<i64: 256, 256>}, {transform_indices = @transform_2, window_bounds = array<i64: 128, 256>}]} {
    %c0_i32 = arith.constant 0 : i32
    %0 = arith.cmpi eq, %arg2, %c0_i32 : i32
    %1 = arith.extui %0 : i1 to i32
    %c0_i32_0 = arith.constant 0 : i32
    %2 = arith.cmpi ne, %1, %c0_i32_0 : i32
    scf.if %2 {
      %cst_10 = arith.constant 0.000000e+00 : f32
      %12 = vector.broadcast %cst_10 : f32 to vector<128x256xf32>
      %c0_11 = arith.constant 0 : index
      %c0_12 = arith.constant 0 : index
      %13 = vector.load %arg6[%c0_11, %c0_12] : memref<128x256xf32, #tpu.memory_space<vmem>>, vector<128x256xf32>
      tpu.vector_store %arg6[%c0_11, %c0_12], %12 {strides = array<i32>} : memref<128x256xf32, #tpu.memory_space<vmem>>, vector<128x256xf32>,
    } else {
    }
    %c0 = arith.constant 0 : index
    %c0_1 = arith.constant 0 : index
    %3 = vector.load %arg6[%c0, %c0_1] : memref<128x256xf32, #tpu.memory_space<vmem>>, vector<128x256xf32>
    %c0_2 = arith.constant 0 : index
    %c0_3 = arith.constant 0 : index
    %4 = vector.load %arg3[%c0_2, %c0_3] : memref<128x256xbf16, #tpu.memory_space<vmem>>, vector<128x256xbf16>
    %c0_4 = arith.constant 0 : index
    %c0_5 = arith.constant 0 : index
    %5 = vector.load %arg4[%c0_4, %c0_5] : memref<256x256xbf16, #tpu.memory_space<vmem>>, vector<256x256xbf16>
    %cst = arith.constant dense<0.000000e+00> : vector<128x256xf32>
    %6 = tpu.matmul %4, %5, %cst {dimension_numbers = #tpu.dot_dimension_numbers<[1], [0], [0], [1], [0, 0, 1, 1], [], []>} : vector<128x256xbf16>, vector<256x256xbf16>, vector<128x256xf32> -> vector<128x256xf32>
    %7 = arith.addf %3, %6 : vector<128x256xf32>
    %c0_6 = arith.constant 0 : index
    %c0_7 = arith.constant 0 : index
    %8 = vector.load %arg6[%c0_6, %c0_7] : memref<128x256xf32, #tpu.memory_space<vmem>>, vector<128x256xf32>
    tpu.vector_store %arg6[%c0_6, %c0_7], %7 {strides = array<i32>} : memref<128x256xf32, #tpu.memory_space<vmem>>, vector<128x256xf32>,
    %c0_i32_8 = arith.constant 0 : i32
    %9 = arith.cmpi eq, %arg2, %c0_i32_8 : i32
    %10 = arith.extui %9 : i1 to i32
    %c0_i32_9 = arith.constant 0 : i32
    %11 = arith.cmpi ne, %10, %c0_i32_9 : i32
    scf.if %11 {
      %c0_10 = arith.constant 0 : index
      %c0_11 = arith.constant 0 : index
      %12 = vector.load %arg6[%c0_10, %c0_11] : memref<128x256xf32, #tpu.memory_space<vmem>>, vector<128x256xf32>
      %13 = arith.truncf %12 : vector<128x256xf32> to vector<128x256xbf16>
      %c0_12 = arith.constant 0 : index
      %c0_13 = arith.constant 0 : index
      %14 = vector.load %arg5[%c0_12, %c0_13] : memref<128x256xbf16, #tpu.memory_space<vmem>>, vector<128x256xbf16>
      tpu.vector_store %arg5[%c0_12, %c0_13], %13 {strides = array<i32>} : memref<128x256xbf16, #tpu.memory_space<vmem>>, vector<128x256xbf16>,
    } else {
    }
    return
  }
  func.func @transform_0(%arg0: i32, %arg1: i32, %arg2: i32) -> (i32, i32) {
    %c0_i32 = arith.constant 0 : i32
    return %arg0, %arg2 : i32, i32
  }
  func.func @transform_1(%arg0: i32, %arg1: i32, %arg2: i32) -> (i32, i32) {
    %c0_i32 = arith.constant 0 : i32
    return %arg2, %arg1 : i32, i32
  }
  func.func @transform_2(%arg0: i32, %arg1: i32, %arg2: i32) -> (i32, i32) {
    %c0_i32 = arith.constant 0 : i32
    return %arg0, %arg1 : i32, i32
  }
}

</mosaic_0001>

<bundles_post_ra>
// kernel: tpu_custom_call.1
= control target key start
LH: loop header
LB: loop body
LE: loop exit
PB: predicated region body
PF: predicated region fallthrough
CT: control target
= control target key end

     0   :  { %7 = vsyncpa [#allocation4], 0  ;;  %s1031_s0 = inlined_call_operand.hbm [shape: bf16[128,256], index: 0, kind: input, shape index: {}]   ;;  %s1032_s1 = inlined_call_operand.hbm [shape: bf16[256,256], index: 1, kind: input, shape index: {}]   ;;  %s1033_s2 = inlined_call_operand.hbm [shape: bf16[128,256], index: 2, kind: output, shape index: {}]  }
   0x1   :  { %8 = vsyncpa [#allocation7], 0 }
   0x2   :  { %9 = vsyncpa [#allocation5], 0  ;;  %s993_s9 = smov [#allocation3]  }
   0x3   :  { %s15_s10 = sshll.u32 %s993_s9, 4  ;;  %s16_s10 = int_to_ptr.vmem [resolvable:$true] %s15_s10 }
   0x4   :  { %s935_s11 = scalar_lea.vmem %s16_s10, 2048  ;;  %p940_p1 = scmp.lt.s32.totalorder %s16_s10, %s16_s10 }
   0x5   :  { %p936_p0 = scmp.ne.s32.totalorder %s16_s10, %s935_s11  ;;  %p941_p2 = scmp.lt.s32.totalorder %s935_s11, %s935_s11 }
   0x7   :  { %p942_p3 = por %p941_p2, %p940_p1 }
   0x9   :  { %p943_p4 = pnand %p942_p3, %p936_p0 }
   0xb   :  { %946 = shalt.err (!%p943_p4)
}
   0xc   :  { %s994_s12 = smov 128   ;;  %s995_s13 = smov 8  }
   0xd   :  { %21 = dma.hbm_to_vmem [thread:$0]  %s1031_s0, 2048, %s16_s10, [#allocation4], %s994_s12, %s994_s12, %s995_s13  }
   0xe   :  { %s996_s16 = smov [#allocation6]  }
   0xf   :  { %s27_s17 = sshll.u32 %s996_s16, 4  ;;  %s28_s17 = int_to_ptr.vmem [resolvable:$true] %s27_s17 }
  0x10   :  { %s955_s18 = scalar_lea.vmem %s28_s17, 4096  ;;  %p960_p6 = scmp.lt.s32.totalorder %s28_s17, %s28_s17 }
  0x11   :  { %p956_p5 = scmp.ne.s32.totalorder %s28_s17, %s955_s18  ;;  %p961_p7 = scmp.lt.s32.totalorder %s955_s18, %s955_s18 }
  0x13   :  { %p962_p8 = por %p961_p7, %p960_p6 }
  0x15   :  { %p963_p9 = pnand %p962_p8, %p956_p5 }
  0x17   :  { %966 = shalt.err (!%p963_p9)
}
  0x18   :  { %33 = dma.hbm_to_vmem [thread:$0]  %s1032_s1, 4096, %s28_s17, [#allocation7], %s994_s12, %s994_s12, %s995_s13  }
  0x19   :  { %987 = dma.done.wait [#allocation4], 2048  }
  0x1a   :  { %988 = vsyncadd [#allocation4], 4294965248 }
  0x1b   :  { %989 = dma.done.wait [#allocation7], 4096  }
  0x1c   :  { %990 = vsyncadd [#allocation7], 4294963200  ;;  %v855_v0 = vld [vmem:[#allocation6 + $0x74] ss:$8 sps:$4 sm:$0xff]   ;;  %v857_v1 = vld [vmem:[#allocation6 + $0x70] ss:$8 sps:$4 sm:$0xff]  }
  0x1d   :  { %396 = vmatprep.subr.bf16.mxu0 %v855_v0  ;;  %818 = vmatprep.subr.bf16.mxu1 %v855_v0  ;;  %v858_v2 = vld [vmem:[#allocation6 + $0x64] ss:$8 sps:$4 sm:$0xff]   ;;  %v860_v3 = vld [vmem:[#allocation6 + $0x60] ss:$8 sps:$4 sm:$0xff]   ;;  %v861_v4 = vld [vmem:[#allocation6 + $0x54] ss:$8 sps:$4 sm:$0xff]  }
  0x1e   :  { %397 = vmatpush1.bf16.msra.mxu0 %v857_v1  ;;  %834 = vmatpush1.bf16.msra.mxu1 %v857_v1  ;;  %v863_v5 = vld [vmem:[#allocation6 + $0x50] ss:$8 sps:$4 sm:$0xff]   ;;  %v864_v6 = vld [vmem:[#allocation6 + $0x44] ss:$8 sps:$4 sm:$0xff]   ;;  %v866_v7 = vld [vmem:[#allocation6 + $0x40] ss:$8 sps:$4 sm:$0xff]  }
  0x1f   :  { %398 = vmatprep.subr.bf16.mxu0 %v858_v2  ;;  %819 = vmatprep.subr.bf16.mxu1 %v858_v2  ;;  %v867_v8 = vld [vmem:[#allocation6 + $0x34] ss:$8 sps:$4 sm:$0xff]   ;;  %v869_v9 = vld [vmem:[#allocation6 + $0x30] ss:$8 sps:$4 sm:$0xff]   ;;  %v870_v10 = vld [vmem:[#allocation6 + $0x24] ss:$8 sps:$4 sm:$0xff]  }
  0x20   :  { %v872_v11 = vld [vmem:[#allocation6 + $0x20] ss:$8 sps:$4 sm:$0xff]   ;;  %v873_v12 = vld [vmem:[#allocation6 + $0x14] ss:$8 sps:$4 sm:$0xff]   ;;  %v905_v13 = vld [vmem:[#allocation3 + $0x4] ss:$8 sps:$4 sm:$0xff]  }
  0x21   :  { %v875_v14 = vld [vmem:[#allocation6 + $0x10] ss:$8 sps:$4 sm:$0xff]   ;;  %v908_v15 = vld [vmem:[#allocation3 + $0x44] ss:$8 sps:$4 sm:$0xff]   ;;  %428 = vmatprep.mubr.bf16.mxu0 %v905_v13  ;;  %v878_v17 = vld [vmem:[#allocation6] ss:$8 sps:$4 sm:$0xff]  }
  0x22   :  { %399 = vmatpush1.bf16.msra.mxu0 %v860_v3  ;;  %835 = vmatpush1.bf16.msra.mxu1 %v860_v3  ;;  %v876_v16 = vld [vmem:[#allocation6 + $0x4] ss:$8 sps:$4 sm:$0xff]   ;;  %v879_v18 = vld [vmem:[#allocation6 + $0xf4] ss:$8 sps:$4 sm:$0xff]   ;;  %v881_v19 = vld [vmem:[#allocation6 + $0xf0] ss:$8 sps:$4 sm:$0xff]  }
  0x23   :  { %400 = vmatprep.subr.bf16.mxu0 %v861_v4  ;;  %820 = vmatprep.subr.bf16.mxu1 %v861_v4  ;;  %v882_v20 = vld [vmem:[#allocation6 + $0xe4] ss:$8 sps:$4 sm:$0xff]   ;;  %v884_v21 = vld [vmem:[#allocation6 + $0xe0] ss:$8 sps:$4 sm:$0xff]   ;;  %v885_v22 = vld [vmem:[#allocation6 + $0xd4] ss:$8 sps:$4 sm:$0xff]  }
  0x24   :  { %468 = vmatprep.mubr.bf16.mxu1 %v908_v15  ;;  %v887_v23 = vld [vmem:[#allocation6 + $0xd0] ss:$8 sps:$4 sm:$0xff]   ;;  %v888_v24 = vld [vmem:[#allocation6 + $0xc4] ss:$8 sps:$4 sm:$0xff]   ;;  %v890_v25 = vld [vmem:[#allocation6 + $0xc0] ss:$8 sps:$4 sm:$0xff]  }
  0x25   :  { %v891_v26 = vld [vmem:[#allocation6 + $0xb4] ss:$8 sps:$4 sm:$0xff]   ;;  %v893_v27 = vld [vmem:[#allocation6 + $0xb0] ss:$8 sps:$4 sm:$0xff]   ;;  %v894_v28 = vld [vmem:[#allocation6 + $0xa4] ss:$8 sps:$4 sm:$0xff]  }
  0x26   :  { %401 = vmatpush1.bf16.msra.mxu0 %v863_v5  ;;  %836 = vmatpush1.bf16.msra.mxu1 %v863_v5  ;;  %v896_v29 = vld [vmem:[#allocation6 + $0xa0] ss:$8 sps:$4 sm:$0xff]   ;;  %v897_v30 = vld [vmem:[#allocation6 + $0x94] ss:$8 sps:$4 sm:$0xff]   ;;  %v899_v31 = vld [vmem:[#allocation6 + $0x90] ss:$8 sps:$4 sm:$0xff]  }
  0x27   :  { %402 = vmatprep.subr.bf16.mxu0 %v864_v6  ;;  %821 = vmatprep.subr.bf16.mxu1 %v864_v6  ;;  %v900_v32 = vld [vmem:[#allocation6 + $0x84] ss:$8 sps:$4 sm:$0xff]   ;;  %v902_v33 = vld [vmem:[#allocation6 + $0x80] ss:$8 sps:$4 sm:$0xff]   ;;  %v909_v36 = vld [vmem:[#allocation3 + $0x14] ss:$8 sps:$4 sm:$0xff]  }
  0x28   :  { %v903_v34 = vld [vmem:[#allocation3] ss:$8 sps:$4 sm:$0xff]   ;;  %v911_v37 = vld [vmem:[#allocation3 + $0x54] ss:$8 sps:$4 sm:$0xff]   ;;  %v913_v38 = vld [vmem:[#allocation3 + $0x10] ss:$8 sps:$4 sm:$0xff]  }
  0x29   :  { %v906_v35 = vld [vmem:[#allocation3 + $0x40] ss:$8 sps:$4 sm:$0xff]   ;;  %v914_v39 = vld [vmem:[#allocation3 + $0x50] ss:$8 sps:$4 sm:$0xff]   ;;  %v915_v40 = vld [vmem:[#allocation3 + $0x24] ss:$8 sps:$4 sm:$0xff]  }
  0x2a   :  { %403 = vmatpush1.bf16.msra.mxu0 %v866_v7  ;;  %837 = vmatpush1.bf16.msra.mxu1 %v866_v7  ;;  %v917_v41 = vld [vmem:[#allocation3 + $0x64] ss:$8 sps:$4 sm:$0xff]   ;;  %v919_v42 = vld [vmem:[#allocation3 + $0x20] ss:$8 sps:$4 sm:$0xff]   ;;  %v921_v44 = vld [vmem:[#allocation3 + $0x34] ss:$8 sps:$4 sm:$0xff]  }
  0x2b   :  { %404 = vmatprep.subr.bf16.mxu0 %v867_v8  ;;  %822 = vmatprep.subr.bf16.mxu1 %v867_v8  ;;  %v920_v43 = vld [vmem:[#allocation3 + $0x60] ss:$8 sps:$4 sm:$0xff]   ;;  %v923_v45 = vld [vmem:[#allocation3 + $0x74] ss:$8 sps:$4 sm:$0xff]   ;;  %v925_v46 = vld [vmem:[#allocation3 + $0x30] ss:$8 sps:$4 sm:$0xff]  }
  0x2c   :  { %v926_v47 = vld [vmem:[#allocation3 + $0x70] ss:$8 sps:$4 sm:$0xff]   ;;  %s997_s0 = smov [#allocation8]  }
  0x2d   :  { %s725_s1 = sshll.u32 %s997_s0, 4  ;;  %s726_s1 = int_to_ptr.vmem [resolvable:$true] %s725_s1 }
  0x2e   :  { %405 = vmatpush1.bf16.msra.mxu0 %v869_v9  ;;  %838 = vmatpush1.bf16.msra.mxu1 %v869_v9  ;;  %s967_s21 = scalar_lea.vmem %s726_s1, 2048  ;;  %p972_p11 = scmp.lt.s32.totalorder %s726_s1, %s726_s1 }
  0x2f   :  { %406 = vmatprep.subr.bf16.mxu0 %v870_v10  ;;  %823 = vmatprep.subr.bf16.mxu1 %v870_v10  ;;  %p968_p10 = scmp.ne.s32.totalorder %s726_s1, %s967_s21  ;;  %p973_p12 = scmp.lt.s32.totalorder %s967_s21, %s967_s21 }
  0x31   :  { %p974_p13 = por %p973_p12, %p972_p11 }
  0x32   :  { %407 = vmatpush1.bf16.msra.mxu0 %v872_v11  ;;  %839 = vmatpush1.bf16.msra.mxu1 %v872_v11 }
  0x33   :  { %408 = vmatprep.subr.bf16.mxu0 %v873_v12  ;;  %824 = vmatprep.subr.bf16.mxu1 %v873_v12  ;;  %p975_p0 = pnand %p974_p13, %p968_p10 }
  0x36   :  { %409 = vmatpush1.bf16.msra.mxu0 %v875_v14  ;;  %840 = vmatpush1.bf16.msra.mxu1 %v875_v14 }
  0x37   :  { %410 = vmatprep.subr.bf16.mxu0 %v876_v16  ;;  %825 = vmatprep.subr.bf16.mxu1 %v876_v16 }
  0x3a   :  { %411 = vmatpush1.bf16.msra.mxu0 %v878_v17  ;;  %841 = vmatpush1.bf16.msra.mxu1 %v878_v17 }
  0x3b   :  { %412 = vmatprep.subr.bf16.mxu0 %v879_v18  ;;  %826 = vmatprep.subr.bf16.mxu1 %v879_v18 }
  0x3e   :  { %413 = vmatpush2.bf16.msra.mxu0 %v881_v19  ;;  %842 = vmatpush2.bf16.msra.mxu1 %v881_v19 }
  0x3f   :  { %414 = vmatprep.subr.bf16.mxu0 %v882_v20  ;;  %827 = vmatprep.subr.bf16.mxu1 %v882_v20 }
  0x42   :  { %415 = vmatpush2.bf16.msra.mxu0 %v884_v21  ;;  %843 = vmatpush2.bf16.msra.mxu1 %v884_v21 }
  0x43   :  { %416 = vmatprep.subr.bf16.mxu0 %v885_v22  ;;  %828 = vmatprep.subr.bf16.mxu1 %v885_v22 }
  0x46   :  { %417 = vmatpush2.bf16.msra.mxu0 %v887_v23  ;;  %844 = vmatpush2.bf16.msra.mxu1 %v887_v23 }
  0x47   :  { %418 = vmatprep.subr.bf16.mxu0 %v888_v24  ;;  %829 = vmatprep.subr.bf16.mxu1 %v888_v24 }
  0x4a   :  { %419 = vmatpush2.bf16.msra.mxu0 %v890_v25  ;;  %845 = vmatpush2.bf16.msra.mxu1 %v890_v25 }
  0x4b   :  { %420 = vmatprep.subr.bf16.mxu0 %v891_v26  ;;  %830 = vmatprep.subr.bf16.mxu1 %v891_v26 }
  0x4e   :  { %421 = vmatpush2.bf16.msra.mxu0 %v893_v27  ;;  %846 = vmatpush2.bf16.msra.mxu1 %v893_v27 }
  0x4f   :  { %422 = vmatprep.subr.bf16.mxu0 %v894_v28  ;;  %831 = vmatprep.subr.bf16.mxu1 %v894_v28 }
  0x52   :  { %423 = vmatpush2.bf16.msra.mxu0 %v896_v29  ;;  %847 = vmatpush2.bf16.msra.mxu1 %v896_v29 }
  0x53   :  { %424 = vmatprep.subr.bf16.mxu0 %v897_v30  ;;  %832 = vmatprep.subr.bf16.mxu1 %v897_v30 }
  0x56   :  { %425 = vmatpush2.bf16.msra.mxu0 %v899_v31  ;;  %848 = vmatpush2.bf16.msra.mxu1 %v899_v31 }
  0x57   :  { %426 = vmatprep.subr.bf16.mxu0 %v900_v32  ;;  %833 = vmatprep.subr.bf16.mxu1 %v900_v32 }
  0x5a   :  { %427 = vmatpush2.bf16.msra.mxu0 %v902_v33  ;;  %849 = vmatpush2.bf16.msra.mxu1 %v902_v33 }
  0x5d   :  { %429 = vmatmul.mubr.bf16.vlgmr.msra.gmra.mxu0 %v903_v34  ;;  %469 = vmatmul.mubr.bf16.vlgmr.msra.gmra.mxu1 %v906_v35 }
  0x5e   :  { %438 = vmatprep.mubr.bf16.mxu0 %v909_v36  ;;  %478 = vmatprep.mubr.bf16.mxu1 %v911_v37 }
  0x65   :  { %439 = vmatmul.mubr.bf16.gmra.mxu0 %v913_v38  ;;  %479 = vmatmul.mubr.bf16.gmra.mxu1 %v914_v39 }
  0x66   :  { %448 = vmatprep.mubr.bf16.mxu0 %v915_v40  ;;  %488 = vmatprep.mubr.bf16.mxu1 %v917_v41 }
  0x6d   :  { %449 = vmatmul.mubr.bf16.gmra.mxu0 %v919_v42  ;;  %489 = vmatmul.mubr.bf16.gmra.mxu1 %v920_v43 }
  0x6e   :  { %458 = vmatprep.mubr.bf16.mxu0 %v921_v44  ;;  %498 = vmatprep.mubr.bf16.mxu1 %v923_v45 }
  0x75   :  { %459 = vmatmul.mubr.bf16.gmra.mxu0 %v925_v46  ;;  %499 = vmatmul.mubr.bf16.gmra.mxu1 %v926_v47 }
 0x11d   :  { %v430_v48 = vpop.f32.mrf.mxu0  ;;  %v470_v49 = vpop.f32.mrf.mxu1 }
 0x11f   :  { %v432_v50 = vpop.f32.mrf.mxu0  ;;  %v472_v51 = vpop.f32.mrf.mxu1 }
 0x120   :  { %v802_v52 = vpack.c.bf16 %v432_v50, %v430_v48  ;;  %v810_v53 = vpack.c.bf16 %v472_v51, %v470_v49 }
 0x121   :  { %v434_v54 = vpop.f32.mrf.mxu0  ;;  %v474_v55 = vpop.f32.mrf.mxu1 }
 0x122   :  { %704 = vst [vmem:[#allocation8] sm:$0xff] %v802_v52  ;;  %712 = vst [vmem:[#allocation8 + $0x40] sm:$0xff] %v810_v53 }
 0x123   :  { %v436_v56 = vpop.f32.mrf.mxu0  ;;  %v476_v57 = vpop.f32.mrf.mxu1 }
 0x124   :  { %v803_v58 = vpack.c.bf16 %v436_v56, %v434_v54  ;;  %v811_v59 = vpack.c.bf16 %v476_v57, %v474_v55 }
 0x125   :  { %v440_v60 = vpop.f32.mrf.mxu0  ;;  %v480_v61 = vpop.f32.mrf.mxu1 }
 0x126   :  { %705 = vst [vmem:[#allocation8 + $0x8] sm:$0xff] %v803_v58  ;;  %713 = vst [vmem:[#allocation8 + $0x48] sm:$0xff] %v811_v59 }
 0x127   :  { %v442_v62 = vpop.f32.mrf.mxu0  ;;  %v482_v63 = vpop.f32.mrf.mxu1 }
 0x128   :  { %v804_v0 = vpack.c.bf16 %v442_v62, %v440_v60  ;;  %v812_v1 = vpack.c.bf16 %v482_v63, %v480_v61 }
 0x129   :  { %v444_v2 = vpop.f32.mrf.mxu0  ;;  %v484_v3 = vpop.f32.mrf.mxu1 }
 0x12a   :  { %706 = vst [vmem:[#allocation8 + $0x10] sm:$0xff] %v804_v0  ;;  %714 = vst [vmem:[#allocation8 + $0x50] sm:$0xff] %v812_v1 }
 0x12b   :  { %v446_v4 = vpop.f32.mrf.mxu0  ;;  %v486_v5 = vpop.f32.mrf.mxu1 }
 0x12c   :  { %v805_v6 = vpack.c.bf16 %v446_v4, %v444_v2  ;;  %v813_v7 = vpack.c.bf16 %v486_v5, %v484_v3 }
 0x12d   :  { %v450_v8 = vpop.f32.mrf.mxu0  ;;  %v490_v9 = vpop.f32.mrf.mxu1 }
 0x12e   :  { %707 = vst [vmem:[#allocation8 + $0x18] sm:$0xff] %v805_v6  ;;  %715 = vst [vmem:[#allocation8 + $0x58] sm:$0xff] %v813_v7 }
 0x12f   :  { %v452_v10 = vpop.f32.mrf.mxu0  ;;  %v492_v11 = vpop.f32.mrf.mxu1 }
 0x130   :  { %v806_v12 = vpack.c.bf16 %v452_v10, %v450_v8  ;;  %v814_v13 = vpack.c.bf16 %v492_v11, %v490_v9 }
 0x131   :  { %v454_v14 = vpop.f32.mrf.mxu0  ;;  %v494_v15 = vpop.f32.mrf.mxu1 }
 0x132   :  { %708 = vst [vmem:[#allocation8 + $0x20] sm:$0xff] %v806_v12  ;;  %716 = vst [vmem:[#allocation8 + $0x60] sm:$0xff] %v814_v13 }
 0x133   :  { %v456_v16 = vpop.f32.mrf.mxu0  ;;  %v496_v17 = vpop.f32.mrf.mxu1 }
 0x134   :  { %v807_v18 = vpack.c.bf16 %v456_v16, %v454_v14  ;;  %v815_v19 = vpack.c.bf16 %v496_v17, %v494_v15 }
 0x135   :  { %v460_v20 = vpop.f32.mrf.mxu0  ;;  %v500_v21 = vpop.f32.mrf.mxu1 }
 0x136   :  { %709 = vst [vmem:[#allocation8 + $0x28] sm:$0xff] %v807_v18  ;;  %717 = vst [vmem:[#allocation8 + $0x68] sm:$0xff] %v815_v19 }
 0x137   :  { %v462_v22 = vpop.f32.mrf.mxu0  ;;  %v502_v23 = vpop.f32.mrf.mxu1 }
 0x138   :  { %v808_v24 = vpack.c.bf16 %v462_v22, %v460_v20  ;;  %v816_v25 = vpack.c.bf16 %v502_v23, %v500_v21 }
 0x139   :  { %v464_v26 = vpop.f32.mrf.mxu0  ;;  %v504_v27 = vpop.f32.mrf.mxu1 }
 0x13a   :  { %710 = vst [vmem:[#allocation8 + $0x30] sm:$0xff] %v808_v24  ;;  %718 = vst [vmem:[#allocation8 + $0x70] sm:$0xff] %v816_v25 }
 0x13b   :  { %v466_v28 = vpop.f32.mrf.mxu0  ;;  %v506_v29 = vpop.f32.mrf.mxu1 }
 0x13c   :  { %v809_v30 = vpack.c.bf16 %v466_v28, %v464_v26  ;;  %v817_v31 = vpack.c.bf16 %v506_v29, %v504_v27 }
 0x13e   :  { %711 = vst [vmem:[#allocation8 + $0x38] sm:$0xff] %v809_v30  ;;  %719 = vst [vmem:[#allocation8 + $0x78] sm:$0xff] %v817_v31 }
 0x13f   :  { %978 = shalt.err (!%p975_p0)
}
 0x140   :  { %731 = dma.vmem_to_hbm [thread:$0]  %s726_s1, 2048, %s1033_s2, [#allocation5], %s994_s12, %s994_s12, %s995_s13  }
 0x141   :  { %991 = dma.done.wait [#allocation5], 2048  }
 0x142   :  { %992 = vsyncadd [#allocation5], 4294965248 }
 0x143   :  { %735 = vsyncpa [#allocation4], 1 }
 0x144   :  { %736 = vsyncpa [#allocation7], 1 }
 0x145   :  { %737 = vsyncpa [#allocation5], 1 }

</bundles_post_ra>
